<compile_context>
chip_gen: v7x
topology: tpu7x:2x2x1
jax: 0.10.0
libtpu: 0.0.40
codegen_flags: <defaults>
</compile_context>

<pallas_src>
import functools

import jax
import jax.numpy as jnp
from jax.experimental import pallas as pl
from jax.experimental.pallas import tpu as pltpu


LN_EPS = 1e-5  # torch.nn.LayerNorm default


def _round_up(n, m):
    return pl.cdiv(n, m) * m


def _sublane_align(dtype):
    itemsize = jnp.dtype(dtype).itemsize
    return {4: 8, 2: 16, 1: 32}.get(itemsize, 8)


def _vmem_cap_bytes():
    """Per-kernel VMEM budget: device capacity minus headroom, clamped."""
    try:
        cap = int(pltpu.get_tpu_info().vmem_capacity_bytes)
    except Exception:
        cap = 64 << 20  # conservative (v7x per-TC VMEM)
    return int(max(min(cap - (8 << 20), 100 << 20), 16 << 20))


def _mln_kernel(x_ref, c_ref, wr_ref, br_ref, wgb_ref, bgb_ref, o_ref):
    F = x_ref.shape[-1]

    # ---- LayerNorm(x) over feature dim (no affine), biased variance, f32 ----
    # One-pass stats: var = E[x^2] - mean^2, guarded against f32 cancellation.
    x = x_ref[...].astype(jnp.float32)
    mean = jnp.mean(x, axis=-1, keepdims=True)
    mean_sq = jnp.mean(x * x, axis=-1, keepdims=True)
    var = jnp.maximum(mean_sq - mean * mean, 0.0)
    x_ln = (x - mean) * jax.lax.rsqrt(var + LN_EPS)

    # ---- c -> reduce (Linear + ReLU); MXU operands in weight dtype (bf16) ----
    c = c_ref[...].astype(wr_ref.dtype)
    h = jnp.dot(c, wr_ref[...], preferred_element_type=jnp.float32) + br_ref[...]
    h = jnp.maximum(h, 0.0)

    # ---- fused gamma/beta heads: one (F, 2F) matmul, static lane-aligned split
    gb = (jnp.dot(h.astype(wgb_ref.dtype), wgb_ref[...],
                  preferred_element_type=jnp.float32) + bgb_ref[...])
    gamma = gb[:, :F]
    beta = gb[:, F:]

    # ---- modulate (f32), cast to output dtype ----
    o_ref[...] = (gamma * x_ln + beta).astype(o_ref.dtype)


@functools.partial(jax.jit, static_argnames=("tm", "mxu_dtype"))
def mln_forward(x, c, params, *, tm=1024, mxu_dtype=jnp.bfloat16):
    """x: (B, N, f_dim), c: (B, N, c_dim)  ->  (B, N, f_dim)."""
    B, N, F = x.shape
    C = c.shape[-1]
    M = B * N

    align = max(_sublane_align(x.dtype), _sublane_align(c.dtype))
    wdt = jnp.dtype(mxu_dtype).itemsize

    # Aim for >= 2 grid steps (v7x: two TensorCores share the "parallel" axis),
    # shrink the tile for tiny M. No divisibility requirement: the grid uses
    # pl.cdiv and Pallas masks the ragged last row block, so there is no
    # host-side pad of x/c and no output slice.
    tm_eff = int(min(tm, _round_up(pl.cdiv(M, 2), align)))
    tm_eff = max(tm_eff, align)

    def footprint(t):
        # double-buffered row tiles (x, c, out)
        tiles = 2 * t * (F * x.dtype.itemsize + C * c.dtype.itemsize
                         + F * x.dtype.itemsize)
        # double-buffered constant weights / biases
        weights = 2 * (C * F * wdt + 2 * F * F * wdt + 3 * F * 4)
        # in-kernel f32 temporaries (x, x_ln, h, gb, gamma*x_ln, ...):
        interm = 4 * t * (8 * F + C)
        return tiles + weights + interm

    vmem_cap = _vmem_cap_bytes()
    while footprint(tm_eff) > vmem_cap and tm_eff > align:
        tm_eff = max(align, int(_round_up(tm_eff // 2, align)))

    grid_m = int(pl.cdiv(M, tm_eff))
    # Prefer an even step count so both v7x TensorCores stay balanced.
    if grid_m > 1 and grid_m % 2 == 1:
        tm_alt = int(_round_up(pl.cdiv(M, grid_m + 1), align))
        if (tm_alt >= align and pl.cdiv(M, tm_alt) % 2 == 0
                and footprint(tm_alt) <= vmem_cap):
            tm_eff = tm_alt
            grid_m = int(pl.cdiv(M, tm_eff))

    vmem_limit = int(min(max(footprint(tm_eff) + (4 << 20), 16 << 20), vmem_cap))

    x2 = x.reshape(M, F)
    c2 = c.reshape(M, C)

    # Pack weights: reduce in bf16; gamma||beta fused into (F, 2F); biases f32.
    wr = params["wr"].astype(mxu_dtype)                                             # (C, F)
    wgb = jnp.concatenate([params["wg"], params["wb"]], axis=-1).astype(mxu_dtype)  # (F, 2F)
    br = params["br"].astype(jnp.float32)                                           # (1, F)
    bgb = jnp.concatenate([params["bg"], params["bb"]], axis=-1).astype(jnp.float32)  # (1, 2F)

    row_spec = lambda shape: pl.BlockSpec(shape, lambda i: (i, 0))
    full_spec = lambda shape: pl.BlockSpec(shape, lambda i: (0, 0))
    # TODO(synk): single-buffer the constant weight blocks (pipeline_mode=
    # pl.Buffered(1)) when scaling F to 512+ to reclaim their double-buffer VMEM.

    out = pl.pallas_call(
        _mln_kernel,
        out_shape=jax.ShapeDtypeStruct((M, F), x.dtype),
        grid_spec=pltpu.PrefetchScalarGridSpec(
            num_scalar_prefetch=0,
            grid=(grid_m,),
            in_specs=[
                row_spec((tm_eff, F)),   # x rows
                row_spec((tm_eff, C)),   # c rows
                full_spec((C, F)),       # reduce weight (bf16)
                full_spec((1, F)),       # reduce bias (f32)
                full_spec((F, 2 * F)),   # fused gamma||beta weight (bf16)
                full_spec((1, 2 * F)),   # fused gamma||beta bias (f32)
            ],
            out_specs=row_spec((tm_eff, F)),
        ),
        compiler_params=pltpu.CompilerParams(
            dimension_semantics=("parallel",),
            vmem_limit_bytes=vmem_limit,
        ),
    )(x2, c2, wr, br, wgb, bgb)

    return out.reshape(B, N, F)


def init_mln_params(key, c_dim, f_dim, dtype=jnp.float32):
    """Parameter init mirroring MLN.__init__ / init_weight().

    - reduce Linear: PyTorch default (uniform +-1/sqrt(fan_in)) weight & bias
    - gamma: weight = 0, bias = 1
    - beta : weight = 0, bias = 0
    Weights are stored as (in, out), i.e. already transposed vs nn.Linear.
    """
    kw, kb = jax.random.split(key)
    bound = 1.0 / jnp.sqrt(jnp.array(c_dim, dtype=jnp.float32))
    wr = jax.random.uniform(kw, (c_dim, f_dim), dtype, -bound, bound)
    br = jax.random.uniform(kb, (1, f_dim), dtype, -bound, bound)
    return {
        "wr": wr,
        "br": br,
        "wg": jnp.zeros((f_dim, f_dim), dtype),
        "bg": jnp.ones((1, f_dim), dtype),
        "wb": jnp.zeros((f_dim, f_dim), dtype),
        "bb": jnp.zeros((1, f_dim), dtype),
    }


def _reference(x, c, params, mxu_dtype=jnp.bfloat16):
    """Pure-JAX reference mirroring the kernel's precision (bf16 MXU, f32 acc)."""
    x = x.astype(jnp.float32)
    c = c.astype(jnp.float32)
    mean = jnp.mean(x, axis=-1, keepdims=True)
    var = jnp.mean((x - mean) ** 2, axis=-1, keepdims=True)
    x_ln = (x - mean) * jax.lax.rsqrt(var + LN_EPS)
    h = jnp.dot(c.astype(mxu_dtype), params["wr"].astype(mxu_dtype),
                preferred_element_type=jnp.float32) + params["br"][0]
    h = jnp.maximum(h, 0.0)
    hb = h.astype(mxu_dtype)
    gamma = jnp.dot(hb, params["wg"].astype(mxu_dtype),
                    preferred_element_type=jnp.float32) + params["bg"][0]
    beta = jnp.dot(hb, params["wb"].astype(mxu_dtype),
                   preferred_element_type=jnp.float32) + params["bb"][0]
    return gamma * x_ln + beta


if __name__ == "__main__":
    B, N = 2, 8              # batch, query/sequence
    C_DIM, F_DIM = 32, 128   # latent code dim, feature dim

    key = jax.random.PRNGKey(0)
    kx, kc, kp, kg, kb = jax.random.split(key, 5)
    x = jax.random.normal(kx, (B, N, F_DIM), jnp.float32)
    c = jax.random.normal(kc, (B, N, C_DIM), jnp.float32)

    params = init_mln_params(kp, C_DIM, F_DIM)
    # Exercise the gamma/beta matmul paths with non-zero weights (the PyTorch
    # init zeros them, which would leave those matmuls numerically untested).
    params["wg"] = 0.05 * jax.random.normal(kg, (F_DIM, F_DIM), jnp.float32)
    params["wb"] = 0.05 * jax.random.normal(kb, (F_DIM, F_DIM), jnp.float32)

    # Main check (M=16 -> two 8-row tiles on the parallel axis).
    out = jax.block_until_ready(mln_forward(x, c, params))
    ref = _reference(x, c, params).astype(x.dtype)
    assert out.shape == (B, N, F_DIM)
    assert jnp.allclose(out, ref, atol=2e-3, rtol=2e-3), "mismatch vs reference"

    # Ragged-M check: M=12 -> grid of 2 tiles; last row block is masked by
    # Pallas (no host-side pad / output slice).
    x_r = jax.random.normal(kx, (1, 12, F_DIM), jnp.float32)
    c_r = jax.random.normal(kc, (1, 12, C_DIM), jnp.float32)
    out_r = jax.block_until_ready(mln_forward(x_r, c_r, params))
    ref_r = _reference(x_r, c_r, params).astype(x_r.dtype)
    assert out_r.shape == (1, 12, F_DIM)
    assert jnp.allclose(out_r, ref_r, atol=2e-3, rtol=2e-3), "ragged mismatch"

    # bf16 I/O check (halves the dominant x / out HBM streams when the
    # surrounding model tolerates bf16 activations; tm aligns to 16 here).
    x_b = x.astype(jnp.bfloat16)
    c_b = c.astype(jnp.bfloat16)
    out_b = jax.block_until_ready(mln_forward(x_b, c_b, params))
    ref_b = _reference(x_b, c_b, params)
    assert out_b.dtype == jnp.bfloat16 and out_b.shape == (B, N, F_DIM)
    assert jnp.allclose(out_b.astype(jnp.float32), ref_b,
                        atol=3e-2, rtol=3e-2), "bf16 mismatch"

    print("KERNEL_OK")
</pallas_src>

<mosaic_0001>
module attributes {stable_mosaic.version = 11 : i64} {
  func.func @_mln_kernel(%arg0: i32, %arg1: memref<8x128xf32, #tpu.memory_space<vmem>>, %arg2: memref<8x32xf32, #tpu.memory_space<vmem>>, %arg3: memref<32x128xbf16, #tpu.memory_space<vmem>>, %arg4: memref<1x128xf32, #tpu.memory_space<vmem>>, %arg5: memref<128x256xbf16, #tpu.memory_space<vmem>>, %arg6: memref<1x256xf32, #tpu.memory_space<vmem>>, %arg7: memref<8x128xf32, #tpu.memory_space<vmem>>) attributes {dimension_semantics = [#tpu.dimension_semantics<parallel>], iteration_bounds = array<i64: 2>, scalar_prefetch = 0 : i64, scratch_operands = 0 : i64, tpu.core_type = #tpu.core_type<tc>, window_params = [{transform_indices = @transform_0, window_bounds = array<i64: 8, 128>}, {transform_indices = @transform_1, window_bounds = array<i64: 8, 32>}, {pipeline_mode = #tpu.pipeline_mode<synchronous>, transform_indices = @transform_2, window_bounds = array<i64: 32, 128>}, {pipeline_mode = #tpu.pipeline_mode<synchronous>, transform_indices = @transform_3, window_bounds = array<i64: 1, 128>}, {pipeline_mode = #tpu.pipeline_mode<synchronous>, transform_indices = @transform_4, window_bounds = array<i64: 128, 256>}, {pipeline_mode = #tpu.pipeline_mode<synchronous>, transform_indices = @transform_5, window_bounds = array<i64: 1, 256>}, {transform_indices = @transform_6, window_bounds = array<i64: 8, 128>}]} {
    %c0 = arith.constant 0 : index
    %c0_0 = arith.constant 0 : index
    %0 = vector.load %arg1[%c0, %c0_0] : memref<8x128xf32, #tpu.memory_space<vmem>>, vector<8x128xf32>
    %cst = arith.constant dense<0.000000e+00> : vector<8xf32>
    %1 = vector.multi_reduction <add>, %0, %cst [1] : vector<8x128xf32> to vector<8xf32>
    %2 = vector.shape_cast %1 : vector<8xf32> to vector<8x1xf32>
    %cst_1 = arith.constant 1.280000e+02 : f32
    %3 = vector.broadcast %cst_1 : f32 to vector<8x1xf32>
    %4 = arith.divf %2, %3 : vector<8x1xf32>
    %5 = arith.mulf %0, %0 : vector<8x128xf32>
    %cst_2 = arith.constant dense<0.000000e+00> : vector<8xf32>
    %6 = vector.multi_reduction <add>, %5, %cst_2 [1] : vector<8x128xf32> to vector<8xf32>
    %7 = vector.shape_cast %6 : vector<8xf32> to vector<8x1xf32>
    %cst_3 = arith.constant 1.280000e+02 : f32
    %8 = vector.broadcast %cst_3 : f32 to vector<8x1xf32>
    %9 = arith.divf %7, %8 : vector<8x1xf32>
    %10 = arith.mulf %4, %4 : vector<8x1xf32>
    %11 = arith.subf %9, %10 : vector<8x1xf32>
    %cst_4 = arith.constant 0.000000e+00 : f32
    %12 = vector.broadcast %cst_4 : f32 to vector<8x1xf32>
    %13 = arith.maximumf %11, %12 : vector<8x1xf32>
    %14 = vector.broadcast %4 : vector<8x1xf32> to vector<8x128xf32>
    %15 = arith.subf %0, %14 : vector<8x128xf32>
    %cst_5 = arith.constant 9.99999974E-6 : f32
    %16 = vector.broadcast %cst_5 : f32 to vector<8x1xf32>
    %17 = arith.addf %13, %16 : vector<8x1xf32>
    %18 = math.rsqrt %17 : vector<8x1xf32>
    %19 = vector.broadcast %18 : vector<8x1xf32> to vector<8x128xf32>
    %20 = arith.mulf %15, %19 : vector<8x128xf32>
    %c0_6 = arith.constant 0 : index
    %c0_7 = arith.constant 0 : index
    %21 = vector.load %arg2[%c0_6, %c0_7] : memref<8x32xf32, #tpu.memory_space<vmem>>, vector<8x32xf32>
    %22 = arith.truncf %21 : vector<8x32xf32> to vector<8x32xbf16>
    %c0_8 = arith.constant 0 : index
    %c0_9 = arith.constant 0 : index
    %23 = vector.load %arg3[%c0_8, %c0_9] : memref<32x128xbf16, #tpu.memory_space<vmem>>, vector<32x128xbf16>
    %cst_10 = arith.constant dense<0.000000e+00> : vector<8x128xf32>
    %24 = tpu.matmul %22, %23, %cst_10 {dimension_numbers = #tpu.dot_dimension_numbers<[1], [0], [0], [1], [0, 0, 1, 1], [], []>} : vector<8x32xbf16>, vector<32x128xbf16>, vector<8x128xf32> -> vector<8x128xf32>
    %c0_11 = arith.constant 0 : index
    %c0_12 = arith.constant 0 : index
    %25 = vector.load %arg4[%c0_11, %c0_12] : memref<1x128xf32, #tpu.memory_space<vmem>>, vector<1x128xf32>
    %26 = vector.broadcast %25 : vector<1x128xf32> to vector<8x128xf32>
    %27 = arith.addf %24, %26 : vector<8x128xf32>
    %cst_13 = arith.constant 0.000000e+00 : f32
    %28 = vector.broadcast %cst_13 : f32 to vector<8x128xf32>
    %29 = arith.maximumf %27, %28 : vector<8x128xf32>
    %30 = arith.truncf %29 : vector<8x128xf32> to vector<8x128xbf16>
    %c0_14 = arith.constant 0 : index
    %c0_15 = arith.constant 0 : index
    %31 = vector.load %arg5[%c0_14, %c0_15] : memref<128x256xbf16, #tpu.memory_space<vmem>>, vector<128x256xbf16>
    %cst_16 = arith.constant dense<0.000000e+00> : vector<8x256xf32>
    %32 = tpu.matmul %30, %31, %cst_16 {dimension_numbers = #tpu.dot_dimension_numbers<[1], [0], [0], [1], [0, 0, 1, 1], [], []>} : vector<8x128xbf16>, vector<128x256xbf16>, vector<8x256xf32> -> vector<8x256xf32>
    %c0_17 = arith.constant 0 : index
    %c0_18 = arith.constant 0 : index
    %33 = vector.load %arg6[%c0_17, %c0_18] : memref<1x256xf32, #tpu.memory_space<vmem>>, vector<1x256xf32>
    %34 = vector.broadcast %33 : vector<1x256xf32> to vector<8x256xf32>
    %35 = arith.addf %32, %34 : vector<8x256xf32>
    %36 = vector.extract_strided_slice %35 {offsets = [0, 0], sizes = [8, 128], strides = [1, 1]} : vector<8x256xf32> to vector<8x128xf32>
    %37 = vector.extract_strided_slice %35 {offsets = [0, 128], sizes = [8, 128], strides = [1, 1]} : vector<8x256xf32> to vector<8x128xf32>
    %38 = arith.mulf %36, %20 : vector<8x128xf32>
    %39 = arith.addf %38, %37 : vector<8x128xf32>
    %c0_19 = arith.constant 0 : index
    %c0_20 = arith.constant 0 : index
    %40 = vector.load %arg7[%c0_19, %c0_20] : memref<8x128xf32, #tpu.memory_space<vmem>>, vector<8x128xf32>
    tpu.vector_store %arg7[%c0_19, %c0_20], %39 {strides = array<i32>} : memref<8x128xf32, #tpu.memory_space<vmem>>, vector<8x128xf32>,
    return
  }
  func.func @transform_0(%arg0: i32) -> (i32, i32) {
    %c0_i32 = arith.constant 0 : i32
    %c0_i32_0 = arith.constant 0 : i32
    return %arg0, %c0_i32 : i32, i32
  }
  func.func @transform_1(%arg0: i32) -> (i32, i32) {
    %c0_i32 = arith.constant 0 : i32
    %c0_i32_0 = arith.constant 0 : i32
    return %arg0, %c0_i32 : i32, i32
  }
  func.func @transform_2(%arg0: i32) -> (i32, i32) {
    %c0_i32 = arith.constant 0 : i32
    %c0_i32_0 = arith.constant 0 : i32
    %c0_i32_1 = arith.constant 0 : i32
    return %c0_i32, %c0_i32_0 : i32, i32
  }
  func.func @transform_3(%arg0: i32) -> (i32, i32) {
    %c0_i32 = arith.constant 0 : i32
    %c0_i32_0 = arith.constant 0 : i32
    %c0_i32_1 = arith.constant 0 : i32
    return %c0_i32, %c0_i32_0 : i32, i32
  }
  func.func @transform_4(%arg0: i32) -> (i32, i32) {
    %c0_i32 = arith.constant 0 : i32
    %c0_i32_0 = arith.constant 0 : i32
    %c0_i32_1 = arith.constant 0 : i32
    return %c0_i32, %c0_i32_0 : i32, i32
  }
  func.func @transform_5(%arg0: i32) -> (i32, i32) {
    %c0_i32 = arith.constant 0 : i32
    %c0_i32_0 = arith.constant 0 : i32
    %c0_i32_1 = arith.constant 0 : i32
    return %c0_i32, %c0_i32_0 : i32, i32
  }
  func.func @transform_6(%arg0: i32) -> (i32, i32) {
    %c0_i32 = arith.constant 0 : i32
    %c0_i32_0 = arith.constant 0 : i32
    return %arg0, %c0_i32 : i32, i32
  }
}

</mosaic_0001>

<bundles_post_ra>
// kernel: mln_forward.1
= control target key start
LH: loop header
LB: loop body
LE: loop exit
PB: predicated region body
PF: predicated region fallthrough
CT: control target
= control target key end

     0   :  { %11 = vsyncpa [#allocation3], 0  ;;  %s974_s0 = inlined_call_operand.vmem [shape: f32[16,128], index: 0, kind: input, shape index: {}]   ;;  %s975_s1 = inlined_call_operand.vmem [shape: f32[16,32], index: 1, kind: input, shape index: {}]   ;;  %s976_s2 = inlined_call_operand.vmem [shape: bf16[32,128], index: 2, kind: input, shape index: {}]   ;;  %s977_s3 = inlined_call_operand.vmem [shape: f32[1,128], index: 3, kind: input, shape index: {}]   ;;  %s978_s4 = inlined_call_operand.vmem [shape: bf16[128,256], index: 4, kind: input, shape index: {}]   ;;  %s979_s5 = inlined_call_operand.vmem [shape: f32[1,256], index: 5, kind: input, shape index: {}]   ;;  %s980_s6 = inlined_call_operand.hbm [shape: f32[16,128], index: 6, kind: output, shape index: {}]  }
   0x1   :  { %13 = vsyncpa [#allocation3 + $0x1], 0  ;;  %s804_s21 = smov 0   ;;  %s806_s22 = smov 0  }
   0x2   :  { %s808_s23 = smov 0   ;;  %s810_s24 = smov 0  }
   0x3 LB: > { %s825_s25 = sadd.s32 4294967295, %s763_s24   ;;  %s589_s26 = sadd.s32 4294967294, %s763_s24   ;;  %s763_s24 = sphi %s810_s24, %s986_s24   ;;  %s759_s23 = sphi %s808_s23, %s985_s23   ;;  %s755_s22 = sphi %s806_s22, %s984_s22   ;;  %s751_s21 = sphi %s804_s21, %s983_s21  }
   0x4   : > { %s829_s27 = sadd.s32 1, %s763_s24   ;;  %s162_s28 = sadd.s32 1, %s759_s23 }
   0x5   : > { %s159_s29 = ssub.s32 %s763_s24, %s829_s27  ;;  %p172_p0 = scmp.ne.s32.totalorder %s759_s23, %s755_s22 }
   0x6   : > { %p160_p1 = scmp.eq.s32.totalorder %s159_s29, 0  ;;  %p173_p2 = scmp.eq.s32.totalorder %s825_s25, 1 }
   0x7   : > { %p178_p3 = scmp.ne.s32.totalorder %s755_s22, %s751_s21  ;;  %p179_p4 = scmp.eq.s32.totalorder %s589_s26, 1 }
   0x8   : > { %s840_s30 = scalar_select %p160_p1, %s759_s23, %s162_s28  }
   0x9   : > { %p842_p5 = por %p173_p2, %p172_p0  ;;  %p846_p6 = por %p179_p4, %p178_p3 }
   0xa   : > { %p592_p7 = scmp.ge.s32.totalorder %s763_s24, 1  ;;  %p223_p8 = scmp.lt.s32.totalorder %s763_s24, 3 }
   0xc   : > { %p224_p9 = pnand %p592_p7, %p223_p8 }
   0xd   : > { %v673_v0 = vld [vmem:[%s976_s2] sm:$0xff] (!%p224_p9)   ;;  %v765_v1 = vmov (!%p224_p9), 0.0   ;;  %v674_v2 = vld [vmem:[%s976_s2 + $0x8] sm:$0xff] (!%p224_p9)   ;;  %vm766_vm0 = vmmov (!%p224_p9), 0   ;;  %p256_p10 = scmp.lt.s32.totalorder (!%p224_p9), %s825_s25, 1  ;;  %vm306_vm1 = vcmask (!%p224_p9), 261120   ;;  %v370_v40 = vlaneseq (!%p224_p9) }
   0xe   : > { %227 = sbr.rel (%p224_p9) target bundleno = 478 (0x1de), region = 44  ;;  %623 = vmatprep.subr.bf16.mxu0 (!%p224_p9), %v765_v1  ;;  %627 = vmatprep.mubr.msk.bf16.mxu0 (!%p224_p9), %vm766_vm0, %v765_v1  ;;  %v675_v3 = vld [vmem:[%s978_s4 + $0x4] ss:$8 sps:$4 sm:$0xff] (!%p224_p9)   ;;  %v677_v4 = vld [vmem:[%s978_s4] ss:$8 sps:$4 sm:$0xff] (!%p224_p9)   ;;  %v767_v21 = vmov (!%p224_p9), 0  }
   0xf   : > { %624 = vmatpush3.bf16.msra.mxu0 (!%p224_p9), %v673_v0  ;;  %460 = vmatprep.subr.bf16.mxu1 (!%p224_p9), %v675_v3  ;;  %v678_v5 = vld [vmem:[%s978_s4 + $0x14] ss:$8 sps:$4 sm:$0xff] (!%p224_p9)   ;;  %v680_v6 = vld [vmem:[%s978_s4 + $0x10] ss:$8 sps:$4 sm:$0xff] (!%p224_p9)   ;;  %v681_v7 = vld [vmem:[%s978_s4 + $0x24] ss:$8 sps:$4 sm:$0xff] (!%p224_p9)  }
  0x10   : > { %625 = vmatprep.subr.bf16.mxu0 (!%p224_p9), %v765_v1  ;;  %461 = vmatpush1.bf16.msra.mxu1 (!%p224_p9), %v677_v4  ;;  %v683_v10 = vld [vmem:[%s978_s4 + $0x20] ss:$8 sps:$4 sm:$0xff] (!%p224_p9)   ;;  %v684_v11 = vld [vmem:[%s978_s4 + $0x34] ss:$8 sps:$4 sm:$0xff] (!%p224_p9)   ;;  %v686_v12 = vld [vmem:[%s978_s4 + $0x30] ss:$8 sps:$4 sm:$0xff] (!%p224_p9)  }
  0x11   : > { %462 = vmatprep.subr.bf16.mxu1 (!%p224_p9), %v678_v5  ;;  %v687_v13 = vld [vmem:[%s978_s4 + $0x44] ss:$8 sps:$4 sm:$0xff] (!%p224_p9)   ;;  %v689_v14 = vld [vmem:[%s978_s4 + $0x40] ss:$8 sps:$4 sm:$0xff] (!%p224_p9)   ;;  %v690_v15 = vld [vmem:[%s978_s4 + $0x54] ss:$8 sps:$4 sm:$0xff] (!%p224_p9)   ;;  %492 = vmatprep.mubr.bf16.mxu1 (!%p224_p9), %v767_v21 }
  0x12   : > { %v692_v16 = vld [vmem:[%s978_s4 + $0x50] ss:$8 sps:$4 sm:$0xff] (!%p224_p9)   ;;  %v693_v17 = vld [vmem:[%s978_s4 + $0x64] ss:$8 sps:$4 sm:$0xff] (!%p224_p9)   ;;  %v695_v18 = vld [vmem:[%s978_s4 + $0x60] ss:$8 sps:$4 sm:$0xff] (!%p224_p9)  }
  0x13   : > { %626 = vmatpush3.bf16.msra.mxu0 (!%p224_p9), %v674_v2  ;;  %v696_v19 = vld [vmem:[%s978_s4 + $0x74] ss:$8 sps:$4 sm:$0xff] (!%p224_p9)   ;;  %v698_v20 = vld [vmem:[%s978_s4 + $0x70] ss:$8 sps:$4 sm:$0xff] (!%p224_p9)   ;;  %v596_v24 = vld [vmem:[%s977_s3] ss:$0 sm:$0xff] (!%p224_p9) }
  0x14   : > { %463 = vmatpush1.bf16.msra.mxu1 (!%p224_p9), %v680_v6  ;;  %v371_v41 = vshrl.u32 (!%p224_p9), %v370_v40, 7  ;;  %v368_v43 = vld [vmem:[%s979_s5] sm:$0x3] (!%p224_p9)  ;;  %s617_s16 = sshll.u32 (!%p224_p9), %s825_s25, 7 }
  0x15   : > { %s866_s17 = scalar_select %p256_p10, %s825_s25, 1  ;;  %464 = vmatprep.subr.bf16.mxu1 %v681_v7 }
  0x16   : > { %v372_v42 = vsub.s32 0, %v371_v41  ;;  %v376_v44 = vsub.s32 1, %v371_v41  ;;  %s932_s29 = scalar_lea.hbm %s980_s6, %s617_s16  ;;  %s768_s25 = smov [#allocation2]  }
  0x17   : > { %s594_s28 = sshll.u32 %s866_s17, 3  ;;  %s253_s17 = sand.u32 1, %s755_s22  }
  0x18   : > { %s263_s12 = scalar_lea.vmem %s975_s1, %s594_s28  ;;  %465 = vmatpush1.bf16.msra.mxu1 %v683_v10  ;;  %s259_s11 = scalar_lea.vmem %s974_s0, %s594_s28  ;;  %v373_v46 = vrot.slane %v368_v43, %v372_v42  ;;  %v377_v48 = vrot.slane %v368_v43, %v376_v44 }
  0x19   : > { %v281_v8 = vld [vmem:[%s263_s12] sm:$0xff]  ;;  %466 = vmatprep.subr.bf16.mxu1 %v684_v11  ;;  %s593_s15 = sshll.u32 %s253_s17, 3  ;;  %s505_s9 = scalar_lea.sflag [#allocation3], %s253_s17 }
  0x1a   : > { %v282_v9 = vpack.c.bf16 %v281_v8, %v281_v8  ;;  %v265_v22 = vld [vmem:[%s259_s11] sm:$0xff]  ;;  %s255_s18 = scalar_lea.vmem [#allocation2], %s593_s15  ;;  %s705_s11 = sshll.u32 %s768_s25, 4  ;;  %s706_s11 = int_to_ptr.vmem [resolvable:$false] %s705_s11 }
  0x1b   : > { %266 = vadd.xlane.f32.xlu0 %v265_v22  ;;  %v270_v23 = vmul.f32 %v265_v22, %v265_v22  ;;  %s518_s19 = sshll.u32 %s255_s18, 4  ;;  %s707_s12 = scalar_lea.vmem %s706_s11, 256  ;;  %s934_s19 = int_to_ptr.vmem [resolvable:$true] %s518_s19 }
  0x1c   : > { %628 = vmatmul.mubr.msk.bf16.vlgmr.msra.gmra.mrb[0].mxu0 %vm306_vm1, %v282_v9  ;;  %467 = vmatpush1.bf16.msra.mxu1 %v686_v12  ;;  %s701_s10 = scalar_lea.vmem %s934_s19, 128  ;;  %p708_p0 = scmp.lt.s32.totalorder %s934_s19, %s706_s11 }
  0x1d   : > { %468 = vmatprep.subr.bf16.mxu1 %v687_v13  ;;  %p702_p11 = scmp.ne.s32.totalorder %s934_s19, %s701_s10  ;;  %p709_p1 = scmp.lt.s32.totalorder %s707_s12, %s701_s10 }
  0x1f   : > { %271 = vadd.xlane.f32.xlu0 %v270_v23  ;;  %p703_p12 = pnand %p702_p11, %p842_p5  ;;  %p710_p2 = por %p709_p1, %p708_p0 }
  0x20   : > { %469 = vmatpush1.bf16.msra.mxu1 %v689_v14 }
  0x21   : > { %470 = vmatprep.subr.bf16.mxu1 %v690_v15  ;;  %p704_p13 = pneg %p703_p12 }
  0x23   : > { %p711_p3 = pnand %p710_p2, %p704_p13 }
  0x24   : > { %471 = vmatpush1.bf16.msra.mxu1 %v692_v16 }
  0x25   : > { %472 = vmatprep.subr.bf16.mxu1 %v693_v17 }
  0x28   : > { %473 = vmatpush1.bf16.msra.mxu1 %v695_v18 }
  0x29   : > { %474 = vmatprep.subr.bf16.mxu1 %v696_v19 }
  0x2c   : > { %475 = vmatpush1.bf16.msra.mxu1 %v698_v20 }
  0xa8   : > { %v267_v32 = vpop.xlane.xlu0 %266 }
  0xa9   : > { %v269_v33 = vmul.f32 0.0078125, %v267_v32 }
  0xab   : > { %v274_v35 = vmul.f32 %v269_v33, %v269_v33  ;;  %v277_v45 = vsub.f32 %v265_v22, %v269_v33 }
  0xac   : > { %v272_v34 = vpop.xlane.xlu0 %271 }
  0xad   : > { %v273_v36 = vmul.f32 0.0078125, %v272_v34 }
  0xaf   : > { %v275_v37 = vsub.f32 %v273_v36, %v274_v35 }
  0xb1   : > { %v276_v38 = vmax.f32 %v275_v37, 0.0 }
  0xb3   : > { %v278_v39 = vadd.f32 1e-05, %v276_v38 }
  0xb5   : > { %699 = vrsqrt.f32 %v278_v39 }
  0xbf   : > { %v700_v47 = vpop.eup %699 }
  0xc0   : > { %v280_v50 = vmul.f32 %v700_v47, %v277_v45 }
  0xef   : > { %v344_v25 = vpop.f32.mrb[0].mxu0 }
  0xf0   : > { %v345_v26 = vadd.f32 %v596_v24, %v344_v25  ;;  %v629_v27 = vpop.f32.mrb[1].mxu0 }
  0xf1   : > { %v347_v28 = vpop.f32.mrb[2].mxu0 }
  0xf2   : > { %v350_v29 = vmax.f32 %v345_v26, 0.0  ;;  %v630_v30 = vpop.f32.mrb[3].mxu0 }
  0xf4   : > { %v351_v31 = vpack.c.bf16 %v350_v29, %v350_v29 }
  0xf6   : > { %493 = vmatmul.mubr.bf16.vlgmr.msra.gmra.mrb[0].mxu1 %v351_v31 }
 0x1c9   : > { %v494_v49 = vpop.f32.mrb[0].mxu1 }
 0x1ca   : > { %v495_v51 = vadd.f32 %v494_v49, %v373_v46  ;;  %v496_v52 = vpop.f32.mrb[1].mxu1 }
 0x1cb   : > { %v497_v53 = vadd.f32 %v496_v52, %v377_v48  ;;  %v498_v54 = vpop.f32.mrb[2].mxu1 }
 0x1cc   : > { %v501_v55 = vmul.f32 %v495_v51, %v280_v50  ;;  %v499_v56 = vpop.f32.mrb[3].mxu1 }
 0x1ce   : > { %v502_v57 = vadd.f32 %v501_v55, %v497_v53 }
 0x1d0   : > { %503 = vst [vmem:[%s255_s18] sm:$0xff] %v502_v57 }
 0x1d1   : > { %714 = shalt.err (!%p711_p3)
}
 0x1d2   : > { %s715_s13 = scalar_lea.hbm %s932_s29, 128  ;;  %s719_s14 = scalar_lea.hbm %s980_s6, 256 }
 0x1d3   : > { %p716_p4 = scmp.ne.s32.totalorder %s932_s29, %s715_s13  ;;  %p720_p9 = scmp.lt.u32.totalorder %s932_s29, %s980_s6 }
 0x1d4   : > { %p721_p10 = scmp.lt.u32.totalorder %s719_s14, %s715_s13  ;;  %p723_p12 = scmp.lt.u32.totalorder %s715_s13, %s932_s29 }
 0x1d5   : > { %p717_p7 = pnand %p716_p4, %p842_p5 }
 0x1d6   : > { %p722_p11 = por %p721_p10, %p720_p9 }
 0x1d7   : > { %p718_p8 = pneg %p717_p7 }
 0x1d8   : > { %p724_p13 = por %p723_p12, %p722_p11 }
 0x1da   : > { %p725_p0 = pnand %p724_p13, %p718_p8 }
 0x1dc   : > { %728 = shalt.err (!%p725_p0)
}
 0x1dd   : > { %631 = dma.vmem_to_hbm [thread:$0]  (%p842_p5), %s934_s19, 128, %s932_s29, %s505_s9  }
 0x1de PF: > { %p637_p1 = scmp.ge.s32.totalorder %s763_s24, 2  ;;  %s530_s18 = sand.u32 1, %s751_s21  }
 0x1df   : > { %s531_s20 = scalar_lea.sflag [#allocation3], %s530_s18 }
 0x1e0   : > { %p634_p2 = pnand %p637_p1, %p846_p6 }
 0x1e2   : > { %746 = dma.done.wait (!%p634_p2), %s531_s20, 128  }
 0x1e3   : > { %748 = vsyncadd (!%p634_p2), %s531_s20, 4294967168  ;;  %p16_p3 = scmp.ge.s32.totalorder %s829_s27, 4   ;;  %s983_s21 = smov %s755_s22 }
 0x1e4   : > { %s984_s22 = smov %s759_s23  ;;  %s985_s23 = smov %s840_s30 }
 0x1e5   : > { %s986_s24 = smov %s829_s27  ;;  %18 = sbr.rel (!%p16_p3) target bundleno = 3 (0x3), region = 82 }
 0x1ec   :  { %536 = vsyncpa [#allocation3], 1 }
 0x1ed   :  { %538 = vsyncpa [#allocation3 + $0x1], 1 }

</bundles_post_ra>
